<compile_context>
chip_gen: v7x
topology: tpu7x:2x2x1
jax: 0.10.0
libtpu: 0.0.40
codegen_flags: <defaults>
</compile_context>

<pallas_src>
import functools

import jax
import jax.numpy as jnp
from jax.experimental import pallas as pl
from jax.experimental.pallas import tpu as pltpu

LANE = 128


def _round_up(n, m):
    return ((n + m - 1) // m) * m


# -----------------------------------------------------------------------------
# Pallas kernel: fused 3-layer ensemble MLP.
# Each grid step processes `e_blk` ensemble members for one batch tile.
# -----------------------------------------------------------------------------
def _ensemble_mlp_kernel(x_ref, w0_ref, b0_ref, w1_ref, b1_ref, w2_ref, b2_ref,
                         o_ref, *, e_blk, x_shared, mxu_dtype):
    if x_shared:
        # x block is (TB, D_in_p); the same block is reused by every ensemble
        # chunk (index_map is constant along the ensemble grid axis), so load
        # and cast it exactly once per grid step.
        x_shared_m = x_ref[...].astype(mxu_dtype)

    for j in range(e_blk):  # small static unroll over ensemble members
        xj = x_shared_m if x_shared else x_ref[j].astype(mxu_dtype)

        # hidden layer 0: relu(x @ W0 + b0)  (f32 accumulate, f32 elementwise)
        h = jnp.dot(xj, w0_ref[j].astype(mxu_dtype),
                    preferred_element_type=jnp.float32)
        h = jnp.maximum(h + b0_ref[j], 0.0)

        # hidden layer 1: relu(h @ W1 + b1)
        h = jnp.dot(h.astype(mxu_dtype), w1_ref[j].astype(mxu_dtype),
                    preferred_element_type=jnp.float32)
        h = jnp.maximum(h + b1_ref[j], 0.0)

        # last layer: identity(h @ W2 + b2) -> lane-dense (TB, D_out_p) store
        o = jnp.dot(h.astype(mxu_dtype), w2_ref[j].astype(mxu_dtype),
                    preferred_element_type=jnp.float32)
        o_ref[j] = (o + b2_ref[j]).astype(o_ref.dtype)


def _pick_batch_tile(B, max_tile=512):
    """Largest multiple-of-8 tile <= max_tile that divides B (else full B)."""
    if B <= max_tile:
        return B
    for tb in range(max_tile - max_tile % 8, 7, -8):
        if B % tb == 0:
            return tb
    return B


def ensemble_mlp_pallas(x, W0, b0, W1, b1, W2, b2, *, x_shared,
                        matmul_dtype=jnp.float32):
    """x: (B, D_in_p) if x_shared else (E, B, D_in_p); params pre-padded."""
    E, D_in_p, H0_p = W0.shape
    H1_p = W1.shape[2]
    D_out_p = W2.shape[2]
    B = x.shape[-2]

    # Coarsen the ensemble grid: >=2 chunks keeps both v7x TCs busy while each
    # step does enough work to hide per-step pipeline overhead.
    G = 2 if (E % 2 == 0 and E >= 2) else 1
    e_blk = E // G

    TB = _pick_batch_tile(B)
    NBT = B // TB

    kernel = functools.partial(_ensemble_mlp_kernel, e_blk=e_blk,
                               x_shared=x_shared, mxu_dtype=matmul_dtype)

    if x_shared:
        x_spec = pl.BlockSpec((TB, D_in_p), lambda g, t: (t, 0))
        x_rows = 1
    else:
        x_spec = pl.BlockSpec((e_blk, TB, D_in_p), lambda g, t: (g, t, 0))
        x_rows = e_blk

    # Weight/bias index maps ignore the batch-tile axis -> they stay
    # VMEM-resident across batch tiles (batch axis varies fastest).
    in_specs = [
        x_spec,
        pl.BlockSpec((e_blk, D_in_p, H0_p),  lambda g, t: (g, 0, 0)),
        pl.BlockSpec((e_blk, 1, H0_p),       lambda g, t: (g, 0, 0)),
        pl.BlockSpec((e_blk, H0_p, H1_p),    lambda g, t: (g, 0, 0)),
        pl.BlockSpec((e_blk, 1, H1_p),       lambda g, t: (g, 0, 0)),
        pl.BlockSpec((e_blk, H1_p, D_out_p), lambda g, t: (g, 0, 0)),
        pl.BlockSpec((e_blk, 1, D_out_p),    lambda g, t: (g, 0, 0)),
    ]
    out_spec = pl.BlockSpec((e_blk, TB, D_out_p), lambda g, t: (g, t, 0))

    # Explicit VMEM budget: double-buffered working set + headroom, capped
    # well below v7x's 64 MiB physical VMEM.
    w_bytes = jnp.dtype(W0.dtype).itemsize
    per_step = (x_rows * TB * D_in_p * 4
                + e_blk * (D_in_p * H0_p + H0_p * H1_p + H1_p * D_out_p) * w_bytes
                + e_blk * (H0_p + H1_p + D_out_p) * 4
                + e_blk * TB * D_out_p * 4)
    vmem_limit = int(min(max(4 * per_step + (2 << 20), 4 << 20), 48 << 20))

    return pl.pallas_call(
        kernel,
        out_shape=jax.ShapeDtypeStruct((E, B, D_out_p), jnp.float32),
        grid_spec=pltpu.PrefetchScalarGridSpec(
            num_scalar_prefetch=0,
            grid=(G, NBT),
            in_specs=in_specs,
            out_specs=out_spec),
        compiler_params=pltpu.CompilerParams(
            dimension_semantics=("parallel", "parallel"),
            vmem_limit_bytes=vmem_limit),
    )(x, W0, b0, W1, b1, W2, b2)


# -----------------------------------------------------------------------------
# Parameter init / prep + forward glue, matching the PyTorch module.
# -----------------------------------------------------------------------------
def init_params(key, ensemble_size, hidden_sizes, input_size, output_size,
                init_w=0.003, b_init_value=0.1, w_scale=1.0):
    """Mirrors fanin_init hidden layers + uniform(-init_w, init_w) last layer."""
    params = {}
    sizes = [input_size] + list(hidden_sizes)
    keys = jax.random.split(key, len(hidden_sizes) + 2)
    for i, (din, dout) in enumerate(zip(sizes[:-1], sizes[1:])):
        bound = w_scale / float(din) ** 0.5
        params[f"W{i}"] = jax.random.uniform(
            keys[i], (ensemble_size, din, dout), jnp.float32, -bound, bound)
        params[f"b{i}"] = jnp.full((ensemble_size, 1, dout), b_init_value,
                                   jnp.float32)
    li = len(hidden_sizes)
    params[f"W{li}"] = jax.random.uniform(
        keys[li], (ensemble_size, sizes[-1], output_size), jnp.float32,
        -init_w, init_w)
    params[f"b{li}"] = jax.random.uniform(
        keys[li + 1], (ensemble_size, 1, output_size), jnp.float32,
        -init_w, init_w)
    return params


def prepare_kernel_params(params, matmul_dtype=jnp.float32):
    """Zero-pad every layer dim to a multiple of 128 (ONCE, not per call) and
    store weights in the MXU operand dtype; biases stay f32."""
    n_layers = sum(1 for k in params if k.startswith("W"))
    out = {}
    for i in range(n_layers):
        W, b = params[f"W{i}"], params[f"b{i}"]
        _, din, dout = W.shape
        din_p, dout_p = _round_up(din, LANE), _round_up(dout, LANE)
        out[f"W{i}"] = jnp.pad(
            W, ((0, 0), (0, din_p - din), (0, dout_p - dout))).astype(matmul_dtype)
        out[f"b{i}"] = jnp.pad(
            b, ((0, 0), (0, 0), (0, dout_p - dout))).astype(jnp.float32)
    return out


def forward(kernel_params, ensemble_size, output_size, *inputs,
            matmul_dtype=jnp.float32):
    """Matches ParallelizedEnsembleFlattenMLP.forward for 1-D/2-D/3-D inputs."""
    # TODO(synk): dropout / layer_norm branches are disabled in the default
    # module config (None) and are not implemented in the kernel.
    flat_inputs = jnp.concatenate(
        [jnp.asarray(v, jnp.float32) for v in inputs], axis=-1)
    dim = flat_inputs.ndim
    if dim == 1:
        flat_inputs = flat_inputs[None, :]
    # dim < 3: x is shared across the ensemble -> keep ONE copy in HBM and let
    # the BlockSpec map every ensemble chunk to it (no broadcast / repeat).
    x_shared = dim < 3

    d_in = flat_inputs.shape[-1]
    d_in_p = kernel_params["W0"].shape[1]
    pad = [(0, 0)] * (flat_inputs.ndim - 1) + [(0, d_in_p - d_in)]
    x = jnp.pad(flat_inputs, pad)

    out = ensemble_mlp_pallas(
        x,
        kernel_params["W0"], kernel_params["b0"],
        kernel_params["W1"], kernel_params["b1"],
        kernel_params["W2"], kernel_params["b2"],
        x_shared=x_shared, matmul_dtype=matmul_dtype)

    out = out[:, :, :output_size]          # drop lane padding
    if dim == 1:
        out = jnp.squeeze(out, axis=1)
    return out


def reference_forward(params, ensemble_size, *inputs):
    """Pure-JAX reference for correctness check (unpadded f32 params)."""
    h = jnp.concatenate([jnp.asarray(v, jnp.float32) for v in inputs], axis=-1)
    if h.ndim == 1:
        h = h[None, :]
    if h.ndim < 3:
        h = jnp.broadcast_to(h[None, ...], (ensemble_size,) + h.shape)
    h = jnp.maximum(jnp.einsum("ebi,eio->ebo", h, params["W0"]) + params["b0"], 0.0)
    h = jnp.maximum(jnp.einsum("ebi,eio->ebo", h, params["W1"]) + params["b1"], 0.0)
    return jnp.einsum("ebi,eio->ebo", h, params["W2"]) + params["b2"]


if __name__ == "__main__":
    ensemble_size = 4
    hidden_sizes = (32, 32)
    state_dim = 12
    action_dim = 4
    input_size = state_dim + action_dim
    output_size = 1
    batch = 8

    key = jax.random.PRNGKey(0)
    k_param, k_obs, k_act, k_obs3, k_act3 = jax.random.split(key, 5)

    raw_params = init_params(k_param, ensemble_size, hidden_sizes,
                             input_size, output_size)
    obs = jax.random.normal(k_obs, (batch, state_dim), jnp.float32)
    act = jax.random.normal(k_act, (batch, action_dim), jnp.float32)

    ref = reference_forward(raw_params, ensemble_size, obs, act)

    # ---- 2-D (shared-x) path, f32 MXU operands (exactness check) ----------
    kp_f32 = prepare_kernel_params(raw_params, matmul_dtype=jnp.float32)
    out_f32 = jax.block_until_ready(
        forward(kp_f32, ensemble_size, output_size, obs, act,
                matmul_dtype=jnp.float32))
    assert out_f32.shape == (ensemble_size, batch, output_size)
    assert jnp.allclose(out_f32, ref, atol=1e-5, rtol=1e-4)

    # ---- 2-D (shared-x) path, bf16 MXU operands (v6e/v7x fast path) -------
    kp_bf16 = prepare_kernel_params(raw_params, matmul_dtype=jnp.bfloat16)
    out_bf16 = jax.block_until_ready(
        forward(kp_bf16, ensemble_size, output_size, obs, act,
                matmul_dtype=jnp.bfloat16))
    assert out_bf16.shape == (ensemble_size, batch, output_size)
    assert jnp.allclose(out_bf16, ref, atol=5e-3, rtol=5e-2)

    # ---- 3-D (per-ensemble x) path, f32 ------------------------------------
    obs3 = jax.random.normal(k_obs3, (ensemble_size, batch, state_dim),
                             jnp.float32)
    act3 = jax.random.normal(k_act3, (ensemble_size, batch, action_dim),
                             jnp.float32)
    ref3 = reference_forward(raw_params, ensemble_size, obs3, act3)
    out3 = jax.block_until_ready(
        forward(kp_f32, ensemble_size, output_size, obs3, act3,
                matmul_dtype=jnp.float32))
    assert out3.shape == (ensemble_size, batch, output_size)
    assert jnp.allclose(out3, ref3, atol=1e-5, rtol=1e-4)

    # ---- 1-D input path (single sample) ------------------------------------
    out1 = jax.block_until_ready(
        forward(kp_f32, ensemble_size, output_size, obs[0], act[0],
                matmul_dtype=jnp.float32))
    ref1 = reference_forward(raw_params, ensemble_size, obs[0], act[0])[:, 0, :]
    assert out1.shape == (ensemble_size, output_size)
    assert jnp.allclose(out1, ref1, atol=1e-5, rtol=1e-4)

    print("KERNEL_OK")
</pallas_src>

<mosaic_0001>
module attributes {stable_mosaic.version = 11 : i64} {
  func.func @_ensemble_mlp_kernel(%arg0: i32, %arg1: i32, %arg2: memref<8x128xf32, #tpu.memory_space<vmem>>, %arg3: memref<2x128x128xf32, #tpu.memory_space<vmem>>, %arg4: memref<2x1x128xf32, #tpu.memory_space<vmem>>, %arg5: memref<2x128x128xf32, #tpu.memory_space<vmem>>, %arg6: memref<2x1x128xf32, #tpu.memory_space<vmem>>, %arg7: memref<2x128x128xf32, #tpu.memory_space<vmem>>, %arg8: memref<2x1x128xf32, #tpu.memory_space<vmem>>, %arg9: memref<2x8x128xf32, #tpu.memory_space<vmem>>) attributes {dimension_semantics = [#tpu.dimension_semantics<parallel>, #tpu.dimension_semantics<parallel>], iteration_bounds = array<i64: 2, 1>, scalar_prefetch = 0 : i64, scratch_operands = 0 : i64, tpu.core_type = #tpu.core_type<tc>, window_params = [{transform_indices = @transform_0, window_bounds = array<i64: 8, 128>}, {transform_indices = @transform_1, window_bounds = array<i64: 2, 128, 128>}, {transform_indices = @transform_2, window_bounds = array<i64: 2, 1, 128>}, {transform_indices = @transform_3, window_bounds = array<i64: 2, 128, 128>}, {transform_indices = @transform_4, window_bounds = array<i64: 2, 1, 128>}, {transform_indices = @transform_5, window_bounds = array<i64: 2, 128, 128>}, {transform_indices = @transform_6, window_bounds = array<i64: 2, 1, 128>}, {transform_indices = @transform_7, window_bounds = array<i64: 2, 8, 128>}]} {
    %c0 = arith.constant 0 : index
    %c0_0 = arith.constant 0 : index
    %0 = vector.load %arg2[%c0, %c0_0] : memref<8x128xf32, #tpu.memory_space<vmem>>, vector<8x128xf32>
    %c0_1 = arith.constant 0 : index
    %c0_2 = arith.constant 0 : index
    %c0_3 = arith.constant 0 : index
    %1 = vector.load %arg3[%c0_1, %c0_2, %c0_3] : memref<2x128x128xf32, #tpu.memory_space<vmem>>, vector<1x128x128xf32>
    %2 = vector.shape_cast %1 : vector<1x128x128xf32> to vector<128x128xf32>
    %cst = arith.constant dense<0.000000e+00> : vector<8x128xf32>
    %3 = tpu.matmul %0, %2, %cst {dimension_numbers = #tpu.dot_dimension_numbers<[1], [0], [0], [1], [0, 0, 1, 1], [], []>} : vector<8x128xf32>, vector<128x128xf32>, vector<8x128xf32> -> vector<8x128xf32>
    %c0_4 = arith.constant 0 : index
    %c0_5 = arith.constant 0 : index
    %c0_6 = arith.constant 0 : index
    %4 = vector.load %arg4[%c0_4, %c0_5, %c0_6] : memref<2x1x128xf32, #tpu.memory_space<vmem>>, vector<1x1x128xf32>
    %5 = vector.shape_cast %4 : vector<1x1x128xf32> to vector<1x128xf32>
    %6 = vector.broadcast %5 : vector<1x128xf32> to vector<8x128xf32>
    %7 = arith.addf %3, %6 : vector<8x128xf32>
    %cst_7 = arith.constant 0.000000e+00 : f32
    %8 = vector.broadcast %cst_7 : f32 to vector<8x128xf32>
    %9 = arith.maximumf %7, %8 : vector<8x128xf32>
    %c0_8 = arith.constant 0 : index
    %c0_9 = arith.constant 0 : index
    %c0_10 = arith.constant 0 : index
    %10 = vector.load %arg5[%c0_8, %c0_9, %c0_10] : memref<2x128x128xf32, #tpu.memory_space<vmem>>, vector<1x128x128xf32>
    %11 = vector.shape_cast %10 : vector<1x128x128xf32> to vector<128x128xf32>
    %cst_11 = arith.constant dense<0.000000e+00> : vector<8x128xf32>
    %12 = tpu.matmul %9, %11, %cst_11 {dimension_numbers = #tpu.dot_dimension_numbers<[1], [0], [0], [1], [0, 0, 1, 1], [], []>} : vector<8x128xf32>, vector<128x128xf32>, vector<8x128xf32> -> vector<8x128xf32>
    %c0_12 = arith.constant 0 : index
    %c0_13 = arith.constant 0 : index
    %c0_14 = arith.constant 0 : index
    %13 = vector.load %arg6[%c0_12, %c0_13, %c0_14] : memref<2x1x128xf32, #tpu.memory_space<vmem>>, vector<1x1x128xf32>
    %14 = vector.shape_cast %13 : vector<1x1x128xf32> to vector<1x128xf32>
    %15 = vector.broadcast %14 : vector<1x128xf32> to vector<8x128xf32>
    %16 = arith.addf %12, %15 : vector<8x128xf32>
    %cst_15 = arith.constant 0.000000e+00 : f32
    %17 = vector.broadcast %cst_15 : f32 to vector<8x128xf32>
    %18 = arith.maximumf %16, %17 : vector<8x128xf32>
    %c0_16 = arith.constant 0 : index
    %c0_17 = arith.constant 0 : index
    %c0_18 = arith.constant 0 : index
    %19 = vector.load %arg7[%c0_16, %c0_17, %c0_18] : memref<2x128x128xf32, #tpu.memory_space<vmem>>, vector<1x128x128xf32>
    %20 = vector.shape_cast %19 : vector<1x128x128xf32> to vector<128x128xf32>
    %cst_19 = arith.constant dense<0.000000e+00> : vector<8x128xf32>
    %21 = tpu.matmul %18, %20, %cst_19 {dimension_numbers = #tpu.dot_dimension_numbers<[1], [0], [0], [1], [0, 0, 1, 1], [], []>} : vector<8x128xf32>, vector<128x128xf32>, vector<8x128xf32> -> vector<8x128xf32>
    %c0_20 = arith.constant 0 : index
    %c0_21 = arith.constant 0 : index
    %c0_22 = arith.constant 0 : index
    %22 = vector.load %arg8[%c0_20, %c0_21, %c0_22] : memref<2x1x128xf32, #tpu.memory_space<vmem>>, vector<1x1x128xf32>
    %23 = vector.shape_cast %22 : vector<1x1x128xf32> to vector<1x128xf32>
    %24 = vector.broadcast %23 : vector<1x128xf32> to vector<8x128xf32>
    %25 = arith.addf %21, %24 : vector<8x128xf32>
    %c0_23 = arith.constant 0 : index
    %c0_24 = arith.constant 0 : index
    %c0_25 = arith.constant 0 : index
    %26 = vector.load %arg9[%c0_23, %c0_24, %c0_25] : memref<2x8x128xf32, #tpu.memory_space<vmem>>, vector<1x8x128xf32>
    %27 = vector.shape_cast %26 : vector<1x8x128xf32> to vector<8x128xf32>
    %28 = vector.shape_cast %25 : vector<8x128xf32> to vector<1x8x128xf32>
    tpu.vector_store %arg9[%c0_23, %c0_24, %c0_25], %28 {strides = array<i32>} : memref<2x8x128xf32, #tpu.memory_space<vmem>>, vector<1x8x128xf32>,
    %c1 = arith.constant 1 : index
    %c0_26 = arith.constant 0 : index
    %c0_27 = arith.constant 0 : index
    %29 = vector.load %arg3[%c1, %c0_26, %c0_27] : memref<2x128x128xf32, #tpu.memory_space<vmem>>, vector<1x128x128xf32>
    %30 = vector.shape_cast %29 : vector<1x128x128xf32> to vector<128x128xf32>
    %cst_28 = arith.constant dense<0.000000e+00> : vector<8x128xf32>
    %31 = tpu.matmul %0, %30, %cst_28 {dimension_numbers = #tpu.dot_dimension_numbers<[1], [0], [0], [1], [0, 0, 1, 1], [], []>} : vector<8x128xf32>, vector<128x128xf32>, vector<8x128xf32> -> vector<8x128xf32>
    %c1_29 = arith.constant 1 : index
    %c0_30 = arith.constant 0 : index
    %c0_31 = arith.constant 0 : index
    %32 = vector.load %arg4[%c1_29, %c0_30, %c0_31] : memref<2x1x128xf32, #tpu.memory_space<vmem>>, vector<1x1x128xf32>
    %33 = vector.shape_cast %32 : vector<1x1x128xf32> to vector<1x128xf32>
    %34 = vector.broadcast %33 : vector<1x128xf32> to vector<8x128xf32>
    %35 = arith.addf %31, %34 : vector<8x128xf32>
    %cst_32 = arith.constant 0.000000e+00 : f32
    %36 = vector.broadcast %cst_32 : f32 to vector<8x128xf32>
    %37 = arith.maximumf %35, %36 : vector<8x128xf32>
    %c1_33 = arith.constant 1 : index
    %c0_34 = arith.constant 0 : index
    %c0_35 = arith.constant 0 : index
    %38 = vector.load %arg5[%c1_33, %c0_34, %c0_35] : memref<2x128x128xf32, #tpu.memory_space<vmem>>, vector<1x128x128xf32>
    %39 = vector.shape_cast %38 : vector<1x128x128xf32> to vector<128x128xf32>
    %cst_36 = arith.constant dense<0.000000e+00> : vector<8x128xf32>
    %40 = tpu.matmul %37, %39, %cst_36 {dimension_numbers = #tpu.dot_dimension_numbers<[1], [0], [0], [1], [0, 0, 1, 1], [], []>} : vector<8x128xf32>, vector<128x128xf32>, vector<8x128xf32> -> vector<8x128xf32>
    %c1_37 = arith.constant 1 : index
    %c0_38 = arith.constant 0 : index
    %c0_39 = arith.constant 0 : index
    %41 = vector.load %arg6[%c1_37, %c0_38, %c0_39] : memref<2x1x128xf32, #tpu.memory_space<vmem>>, vector<1x1x128xf32>
    %42 = vector.shape_cast %41 : vector<1x1x128xf32> to vector<1x128xf32>
    %43 = vector.broadcast %42 : vector<1x128xf32> to vector<8x128xf32>
    %44 = arith.addf %40, %43 : vector<8x128xf32>
    %cst_40 = arith.constant 0.000000e+00 : f32
    %45 = vector.broadcast %cst_40 : f32 to vector<8x128xf32>
    %46 = arith.maximumf %44, %45 : vector<8x128xf32>
    %c1_41 = arith.constant 1 : index
    %c0_42 = arith.constant 0 : index
    %c0_43 = arith.constant 0 : index
    %47 = vector.load %arg7[%c1_41, %c0_42, %c0_43] : memref<2x128x128xf32, #tpu.memory_space<vmem>>, vector<1x128x128xf32>
    %48 = vector.shape_cast %47 : vector<1x128x128xf32> to vector<128x128xf32>
    %cst_44 = arith.constant dense<0.000000e+00> : vector<8x128xf32>
    %49 = tpu.matmul %46, %48, %cst_44 {dimension_numbers = #tpu.dot_dimension_numbers<[1], [0], [0], [1], [0, 0, 1, 1], [], []>} : vector<8x128xf32>, vector<128x128xf32>, vector<8x128xf32> -> vector<8x128xf32>
    %c1_45 = arith.constant 1 : index
    %c0_46 = arith.constant 0 : index
    %c0_47 = arith.constant 0 : index
    %50 = vector.load %arg8[%c1_45, %c0_46, %c0_47] : memref<2x1x128xf32, #tpu.memory_space<vmem>>, vector<1x1x128xf32>
    %51 = vector.shape_cast %50 : vector<1x1x128xf32> to vector<1x128xf32>
    %52 = vector.broadcast %51 : vector<1x128xf32> to vector<8x128xf32>
    %53 = arith.addf %49, %52 : vector<8x128xf32>
    %c1_48 = arith.constant 1 : index
    %c0_49 = arith.constant 0 : index
    %c0_50 = arith.constant 0 : index
    %54 = vector.load %arg9[%c1_48, %c0_49, %c0_50] : memref<2x8x128xf32, #tpu.memory_space<vmem>>, vector<1x8x128xf32>
    %55 = vector.shape_cast %54 : vector<1x8x128xf32> to vector<8x128xf32>
    %56 = vector.shape_cast %53 : vector<8x128xf32> to vector<1x8x128xf32>
    tpu.vector_store %arg9[%c1_48, %c0_49, %c0_50], %56 {strides = array<i32>} : memref<2x8x128xf32, #tpu.memory_space<vmem>>, vector<1x8x128xf32>,
    return
  }
  func.func @transform_0(%arg0: i32, %arg1: i32) -> (i32, i32) {
    %c0_i32 = arith.constant 0 : i32
    %c0_i32_0 = arith.constant 0 : i32
    return %arg1, %c0_i32 : i32, i32
  }
  func.func @transform_1(%arg0: i32, %arg1: i32) -> (i32, i32, i32) {
    %c0_i32 = arith.constant 0 : i32
    %c0_i32_0 = arith.constant 0 : i32
    %c0_i32_1 = arith.constant 0 : i32
    return %arg0, %c0_i32, %c0_i32_0 : i32, i32, i32
  }
  func.func @transform_2(%arg0: i32, %arg1: i32) -> (i32, i32, i32) {
    %c0_i32 = arith.constant 0 : i32
    %c0_i32_0 = arith.constant 0 : i32
    %c0_i32_1 = arith.constant 0 : i32
    return %arg0, %c0_i32, %c0_i32_0 : i32, i32, i32
  }
  func.func @transform_3(%arg0: i32, %arg1: i32) -> (i32, i32, i32) {
    %c0_i32 = arith.constant 0 : i32
    %c0_i32_0 = arith.constant 0 : i32
    %c0_i32_1 = arith.constant 0 : i32
    return %arg0, %c0_i32, %c0_i32_0 : i32, i32, i32
  }
  func.func @transform_4(%arg0: i32, %arg1: i32) -> (i32, i32, i32) {
    %c0_i32 = arith.constant 0 : i32
    %c0_i32_0 = arith.constant 0 : i32
    %c0_i32_1 = arith.constant 0 : i32
    return %arg0, %c0_i32, %c0_i32_0 : i32, i32, i32
  }
  func.func @transform_5(%arg0: i32, %arg1: i32) -> (i32, i32, i32) {
    %c0_i32 = arith.constant 0 : i32
    %c0_i32_0 = arith.constant 0 : i32
    %c0_i32_1 = arith.constant 0 : i32
    return %arg0, %c0_i32, %c0_i32_0 : i32, i32, i32
  }
  func.func @transform_6(%arg0: i32, %arg1: i32) -> (i32, i32, i32) {
    %c0_i32 = arith.constant 0 : i32
    %c0_i32_0 = arith.constant 0 : i32
    %c0_i32_1 = arith.constant 0 : i32
    return %arg0, %c0_i32, %c0_i32_0 : i32, i32, i32
  }
  func.func @transform_7(%arg0: i32, %arg1: i32) -> (i32, i32, i32) {
    %c0_i32 = arith.constant 0 : i32
    %c0_i32_0 = arith.constant 0 : i32
    return %arg0, %arg1, %c0_i32 : i32, i32, i32
  }
}

</mosaic_0001>

<bundles_post_ra>
// kernel: tpu_custom_call.1
= control target key start
LH: loop header
LB: loop body
LE: loop exit
PB: predicated region body
PF: predicated region fallthrough
CT: control target
= control target key end

     0   :  { %s2631_s0 = inlined_call_operand.hbm [shape: f32[8,128], index: 0, kind: input, shape index: {}]   ;;  %s2632_s1 = inlined_call_operand.hbm [shape: f32[4,128,128], index: 1, kind: input, shape index: {}]   ;;  %s2633_s2 = inlined_call_operand.vmem [shape: f32[4,1,128], index: 2, kind: input, shape index: {}]   ;;  %s2634_s3 = inlined_call_operand.hbm [shape: f32[4,128,128], index: 3, kind: input, shape index: {}]   ;;  %s2635_s4 = inlined_call_operand.vmem [shape: f32[4,1,128], index: 4, kind: input, shape index: {}]   ;;  %s2636_s5 = inlined_call_operand.hbm [shape: f32[4,128,128], index: 5, kind: input, shape index: {}]   ;;  %s2637_s6 = inlined_call_operand.vmem [shape: f32[4,1,128], index: 6, kind: input, shape index: {}]   ;;  %s2638_s7 = inlined_call_operand.hbm [shape: f32[4,8,128], index: 7, kind: output, shape index: {}]  }
   0x1   :  { %2659 = sst [smem:[#allocation21_spill]] %s2632_s1 }
   0x2   :  { %2660 = sst [smem:[#allocation22_spill]] %s2634_s3 }
   0x3   :  { %12 = vsyncpa [#allocation3], 0 }
   0x4   :  { %13 = vsyncpa [#allocation6], 0 }
   0x5   :  { %15 = vsyncpa [#allocation6 + $0x1], 0 }
   0x6   :  { %16 = vsyncpa [#allocation9], 0 }
   0x7   :  { %18 = vsyncpa [#allocation9 + $0x1], 0 }
   0x8   :  { %19 = vsyncpa [#allocation4], 0 }
   0x9   :  { %21 = vsyncpa [#allocation4 + $0x1], 0  ;;  %s2130_s24 = smov 0   ;;  %s2132_s25 = smov 0  }
   0xa   :  { %s2134_s26 = smov 0   ;;  %s2136_s27 = smov 0  }
   0xb   :  { %s2138_s28 = smov 0   ;;  %s2140_s29 = smov 0  }
   0xc LB: > { %2661 = sst [smem:[#allocation15_spill]] %s2056_s24  ;;  %s39_s30 = sadd.s32 1, %s2072_s28  ;;  %s2076_s29 = sphi %s2140_s29, %s27_s29   ;;  %s2072_s28 = sphi %s2138_s28, %s2695_s28   ;;  %s2068_s27 = sphi %s2136_s27, %s2694_s27   ;;  %s2064_s26 = sphi %s2134_s26, %s2698_s26   ;;  %s2060_s25 = sphi %s2132_s25, %s2697_s25   ;;  %s2056_s24 = sphi %s2130_s24, %s2696_s24  }
   0xd   : > { %2662 = sst [smem:[#allocation16_spill]] %s2072_s28  ;;  %s72_s8 = sadd.s32 1, %s2064_s26 }
   0xe   : > { %2663 = sst [smem:[#allocation17_spill]] %s2076_s29  ;;  %p41_p0 = scmp.ge.s32.totalorder %s39_s30, 2 }
   0xf   : > { %p2639_p1 = scmp.ne.s32.totalorder %s2064_s26, %s2060_s25  ;;  %p80_p2 = scmp.eq.s32.totalorder %s2076_s29, 0 }
  0x10   : > { %s2700_s30 = smov (%p41_p0, %s39_s30), 0  ;;  %p1809_p5 = scmp.lt.s32.totalorder %s2076_s29, 2 }
  0x11   : > { %2664 = sst [smem:[#allocation18_spill]] %s2700_s30  ;;  %p81_p4 = por %p80_p2, %p2639_p1 }
  0x12   : > { %s69_s9 = ssub.s32 %s2072_s28, %s2700_s30  ;;  %s280_s10 = sand.u32 1, %s2076_s29  }
  0x13   : > { %p70_p6 = scmp.eq.s32.totalorder %s69_s9, 0  ;;  %s2640_s11 = sand.u32 1, %s2064_s26  }
  0x14   : > { %s2177_s12 = sshll.u32 %s2072_s28, 12  ;;  %s2184_s14 = sshll.u32 %s2640_s11, 8 }
  0x15   : > { %s2180_s13 = scalar_select %p70_p6, %s2064_s26, %s72_s8  }
  0x16   : > { %s2666_s1 = sld [smem:[#allocation21_spill]]  ;;  %p2192_p7 = pnand %p1809_p5, %p81_p4 }
  0x17   : > { %2665 = sst [smem:[#allocation19_spill]] %s2180_s13  ;;  %s284_s19 = scalar_lea.vmem [#allocation5], %s2184_s14 }
  0x18   : > { %s2667_s18 = scalar_select %p2192_p7, 1, 0 }
  0x19   : > { %s292_s20 = sshll.u32 %s284_s19, 4  ;;  %s2199_s21 = scalar_lea.sflag [#allocation6], %s280_s10  ;;  %s2197_s20 = int_to_ptr.vmem [resolvable:$true] %s292_s20 }
  0x1a   : > { %p2205_p9 = pneg %p2192_p7 }
  0x1c   : > { %s2190_s17 = scalar_lea.hbm %s2666_s1, %s2177_s12  ;;  %s1873_s15 = scalar_lea.hbm %s2666_s1, 8192 }
  0x1d   : > { %s1868_s22 = scalar_lea.hbm %s2190_s17, 4096  ;;  %p1874_p12 = scmp.lt.u32.totalorder %s2190_s17, %s2666_s1 }
  0x1e   : > { %p1869_p8 = scmp.ne.s32.totalorder %s2190_s17, %s1868_s22  ;;  %p1875_p13 = scmp.lt.u32.totalorder %s1873_s15, %s1868_s22 }
  0x1f   : > { %s2668_s23 = scalar_select %p2205_p9, 1, 0 }
  0x20   : > { %p1871_p10 = pnand %p2205_p9, %p1869_p8  ;;  %p1876_p0 = por %p1875_p13, %p1874_p12 }
  0x21   : > { %p1877_p2 = scmp.lt.u32.totalorder %s1868_s22, %s2190_s17 }
  0x22   : > { %p1872_p11 = pneg %p1871_p10 }
  0x23   : > { %p1878_p4 = por %p1877_p2, %p1876_p0 }
  0x25   : > { %p1879_p5 = pnand %p1878_p4, %p1872_p11 }
  0x27   : > { %1882 = shalt.err (!%p1879_p5)
}
  0x28   : > { %s1883_s10 = scalar_lea.vmem %s2197_s20, 4096  ;;  %s2078_s8 = smov [#allocation5]  }
  0x29   : > { %p1884_p6 = scmp.ne.s32.totalorder %s2197_s20, %s1883_s10  ;;  %s1888_s9 = sshll.u32 %s2078_s8, 4  ;;  %s1889_s9 = int_to_ptr.vmem [resolvable:$false] %s1888_s9 }
  0x2a   : > { %s1890_s16 = scalar_lea.vmem %s1889_s9, 8192  ;;  %p1891_p3 = scmp.lt.s32.totalorder %s2197_s20, %s1889_s9 }
  0x2b   : > { %p1886_p8 = pnand %p1884_p6, %p2205_p9  ;;  %p1892_p1 = scmp.lt.s32.totalorder %s1890_s16, %s1883_s10 }
  0x2d   : > { %p1887_p10 = pneg %p1886_p8  ;;  %p1893_p12 = por %p1892_p1, %p1891_p3 }
  0x2f   : > { %p1894_p13 = pnand %p1893_p12, %p1887_p10 }
  0x31   : > { %1897 = shalt.err (!%p1894_p13)
}
  0x32   : > { %s2641_s22 = smov 128   ;;  %s2643_s15 = smov 8  }
  0x33   : > { %1797 = dma.hbm_to_vmem [thread:$0]  (!%p2192_p7), %s2190_s17, 4096, %s2197_s20, %s2199_s21, %s2641_s22, %s2641_s22, %s2643_s15  }
  0x34   : > { %s2233_s19 = sadd.s32 4294967295, %s2076_s29   ;;  %s1227_s10 = sadd.s32 4294967294, %s2076_s29  }
  0x35   : > { %p85_p1 = scmp.ne.s32.totalorder %s2060_s25, %s2056_s24  ;;  %p2650_p3 = scmp.eq.s32.totalorder %s2233_s19, 0 }
  0x36   : > { %p241_p11 = scmp.eq.s32.totalorder %s2233_s19, 1  ;;  %p247_p0 = scmp.eq.s32.totalorder %s1227_s10, 1 }
  0x37   : > { %p1228_p2 = scmp.ge.s32.totalorder %s2076_s29, 1  ;;  %p2243_p4 = por %p2650_p3, %p85_p1 }
  0x38   : > { %p2670_p5 = scmp.ne.s32.totalorder %s2064_s26, %s2060_s25  ;;  %p2254_p8 = por %p247_p0, %p85_p1 }
  0x39   : > { %s2669_s8 = scalar_select %p2243_p4, 1, 0 }
  0x3a   : > { %p2250_p6 = por %p241_p11, %p2670_p5  ;;  %p254_p10 = scmp.lt.s32.totalorder %s2076_s29, 3 }
  0x3b   : > { %s2672_s20 = scalar_select %p2254_p8, 1, 0 }
  0x3c   : > { %s2671_s17 = scalar_select %p2250_p6, 1, 0 }
  0x3d   : > { %2673 = sst [smem:[#allocation20_spill]] %s2672_s20  ;;  %p2259_p12 = pnand %p1228_p2, %p254_p10 }
  0x3e   : > { %s2081_s16 = smov [#allocation2]   ;;  %s2675_s3 = sld [smem:[#allocation22_spill]] }
  0x3f   : > { %s2674_s9 = scalar_select %p2259_p12, 1, 0 }
  0x40   : > { %s269_s10 = sshll.u32 %s2081_s16, 4  ;;  %p1790_p13 = pneg %p2259_p12  ;;  %s2263_s10 = int_to_ptr.vmem [resolvable:$true] %s269_s10 }
  0x41   : > { %s314_s1 = scalar_lea.vmem [#allocation7], %s2184_s14 }
  0x42   : > { %s322_s30 = sshll.u32 %s314_s1, 4  ;;  %p2276_p1 = pnand %p1790_p13, %p2650_p3  ;;  %s2280_s30 = int_to_ptr.vmem [resolvable:$true] %s322_s30 }
  0x44   : > { %s2271_s15 = scalar_lea.hbm %s2675_s3, %s2177_s12  ;;  %s1903_s13 = scalar_lea.hbm %s2675_s3, 8192 }
  0x45   : > { %s2676_s28 = scalar_select %p2276_p1, 1, 0 }
  0x46   : > { %s1898_s16 = scalar_lea.hbm %s2271_s15, 4096  ;;  %p1904_p5 = scmp.lt.u32.totalorder %s2271_s15, %s2675_s3 }
  0x47   : > { %p1899_p11 = scmp.ne.s32.totalorder %s2271_s15, %s1898_s16  ;;  %p1905_p10 = scmp.lt.u32.totalorder %s1903_s13, %s1898_s16 }
  0x48   : > { %p1907_p3 = scmp.lt.u32.totalorder %s1898_s16, %s2271_s15 }
  0x49   : > { %p1901_p0 = pnand %p1899_p11, %p2205_p9  ;;  %p1906_p13 = por %p1905_p10, %p1904_p5 }
  0x4b   : > { %p1902_p2 = pneg %p1901_p0  ;;  %p1908_p8 = por %p1907_p3, %p1906_p13 }
  0x4d   : > { %p1909_p6 = pnand %p1908_p8, %p1902_p2 }
  0x4f   : > { %1912 = shalt.err (!%p1909_p6)
}
  0x50   : > { %s1913_s1 = scalar_lea.vmem %s2280_s30, 4096  ;;  %s2082_s11 = smov [#allocation7]  }
  0x51   : > { %p1914_p11 = scmp.ne.s32.totalorder %s2280_s30, %s1913_s1  ;;  %s1918_s22 = sshll.u32 %s2082_s11, 4  ;;  %s1919_s22 = int_to_ptr.vmem [resolvable:$false] %s1918_s22 }
  0x52   : > { %s1920_s29 = scalar_lea.vmem %s1919_s22, 8192  ;;  %p1921_p12 = scmp.lt.s32.totalorder %s2280_s30, %s1919_s22 }
  0x53   : > { %p1916_p0 = pnand %p1914_p11, %p2205_p9  ;;  %p1922_p1 = scmp.lt.s32.totalorder %s1920_s29, %s1913_s1 }
  0x55   : > { %p1917_p4 = pneg %p1916_p0  ;;  %p1923_p5 = por %p1922_p1, %p1921_p12 }
  0x57   : > { %p1924_p10 = pnand %p1923_p5, %p1917_p4 }
  0x59   : > { %1927 = shalt.err (!%p1924_p10)
}
  0x5a   : > { %s2677_s13 = smov 8   ;;  %s2678_s20 = smov 128  }
  0x5b   : > { %1800 = dma.hbm_to_vmem [thread:$0]  (!%p2192_p7), %s2271_s15, 4096, %s2280_s30, %s2199_s21, %s2678_s20, %s2678_s20, %s2677_s13  }
  0x5c   : > { %s1928_s11 = scalar_lea.hbm %s2631_s0, 128  ;;  %p2679_p4 = scmp.ne.s32.totalorder %s2676_s28, 0 }
  0x5d   : > { %p1929_p3 = scmp.ne.s32.totalorder %s2631_s0, %s1928_s11  ;;  %p1935_p1 = scmp.lt.u32.totalorder %s1928_s11, %s2631_s0 }
  0x5e   : > { %p1930_p6 = pneg %p2679_p4 }
  0x60   : > { %p1931_p8 = pnand %p1930_p6, %p1929_p3 }
  0x62   : > { %p1932_p12 = pneg %p1931_p8 }
  0x64   : > { %p1937_p2 = pnand %p1935_p1, %p1932_p12 }
  0x66   : > { %1940 = shalt.err (!%p1937_p2)
}
  0x67   : > { %s1941_s30 = scalar_lea.vmem %s2263_s10, 128  ;;  %p1949_p5 = scmp.lt.s32.totalorder %s2263_s10, %s2263_s10 }
  0x68   : > { %p1942_p13 = scmp.ne.s32.totalorder %s2263_s10, %s1941_s30  ;;  %p1950_p10 = scmp.lt.s32.totalorder %s1941_s30, %s1941_s30 }
  0x6a   : > { %p1944_p11 = pnand %p1942_p13, %p1930_p6  ;;  %p1951_p7 = por %p1950_p10, %p1949_p5 }
  0x6c   : > { %p1945_p0 = pneg %p1944_p11 }
  0x6e   : > { %p1952_p9 = pnand %p1951_p7, %p1945_p0 }
  0x70   : > { %1955 = shalt.err (!%p1952_p9)
}
  0x71   : > { %1793 = dma.hbm_to_vmem [thread:$0]  (!%p2679_p4), %s2631_s0, 128, %s2263_s10, [#allocation3]  }
  0x72   : > { %s2332_s16 = scalar_lea.hbm %s2636_s5, %s2177_s12  ;;  %s344_s11 = scalar_lea.vmem [#allocation8], %s2184_s14 }
  0x73   : > { %s352_s28 = sshll.u32 %s344_s11, 4  ;;  %s2680_s22 = sand.u32 1, %s2064_s26   ;;  %s2335_s28 = int_to_ptr.vmem [resolvable:$true] %s352_s28 }
  0x74   : > { %s2339_s1 = scalar_lea.sflag [#allocation9], %s2680_s22  ;;  %s1956_s29 = scalar_lea.hbm %s2332_s16, 4096 }
  0x75   : > { %p1957_p7 = scmp.ne.s32.totalorder %s2332_s16, %s1956_s29  ;;  %p2681_p9 = scmp.ne.s32.totalorder %s2668_s23, 0 }
  0x76   : > { %s1961_s12 = scalar_lea.hbm %s2636_s5, 8192  ;;  %p1962_p6 = scmp.lt.u32.totalorder %s2332_s16, %s2636_s5 }
  0x77   : > { %p1959_p3 = pnand %p1957_p7, %p2681_p9  ;;  %p1963_p8 = scmp.lt.u32.totalorder %s1961_s12, %s1956_s29 }
  0x78   : > { %p1965_p1 = scmp.lt.u32.totalorder %s1956_s29, %s2332_s16 }
  0x79   : > { %p1960_p4 = pneg %p1959_p3  ;;  %p1964_p12 = por %p1963_p8, %p1962_p6 }
  0x7b   : > { %p1966_p2 = por %p1965_p1, %p1964_p12 }
  0x7d   : > { %p1967_p13 = pnand %p1966_p2, %p1960_p4 }
  0x7f   : > { %1970 = shalt.err (!%p1967_p13)
}
  0x80   : > { %s1971_s14 = scalar_lea.vmem %s2335_s28, 4096  ;;  %s2083_s21 = smov [#allocation8]  }
  0x81   : > { %p1972_p11 = scmp.ne.s32.totalorder %s2335_s28, %s1971_s14  ;;  %s1976_s15 = sshll.u32 %s2083_s21, 4  ;;  %s1977_s15 = int_to_ptr.vmem [resolvable:$false] %s1976_s15 }
  0x82   : > { %s1978_s11 = scalar_lea.vmem %s1977_s15, 8192  ;;  %p1979_p10 = scmp.lt.s32.totalorder %s2335_s28, %s1977_s15 }
  0x83   : > { %p1974_p0 = pnand %p1972_p11, %p2681_p9  ;;  %p1980_p7 = scmp.lt.s32.totalorder %s1978_s11, %s1971_s14 }
  0x85   : > { %p1975_p5 = pneg %p1974_p0  ;;  %p1981_p3 = por %p1980_p7, %p1979_p10 }
  0x87   : > { %p1982_p6 = pnand %p1981_p3, %p1975_p5 }
  0x89   : > { %1985 = shalt.err (!%p1982_p6)
}
  0x8a   : > { %p2682_p4 = scmp.ne.s32.totalorder %s2667_s18, 0  ;;  %p2683_p9 = scmp.ne.s32.totalorder %s2674_s9, 0 }
  0x8b   : > { %p2684_p8 = scmp.eq.s32.totalorder (!%p2683_p9), %s2233_s19, 0 }
  0x8c   : > { %1803 = dma.hbm_to_vmem [thread:$0]  (!%p2682_p4), %s2332_s16, 4096, %s2335_s28, %s2339_s1, %s2678_s20, %s2678_s20, %s2677_s13  }
  0x8d   : > { %372 = sbr.rel (%p2683_p9) target bundleno = 1100 (0x44c), region = 48 }
  0x94   : > { %2039 = dma.done.wait (%p2684_p8), [#allocation3], 128   ;;  %p2685_p12 = pmov %p2684_p8 }
  0x95   : > { %s378_s18 = sand.u32 1, %s2233_s19   ;;  %s2374_s23 = sand.u32 1, %s2060_s25  }
  0x96   : > { %2041 = vsyncadd (%p2685_p12), [#allocation3], 4294967168  ;;  %s1245_s22 = sshll.u32 %s2374_s23, 8  ;;  %s379_s29 = scalar_lea.sflag [#allocation6], %s378_s18 }
  0x97   : > { %s2377_s10 = scalar_lea.vmem [#allocation5], %s1245_s22  ;;  %p2686_p1 = scmp.ne.s32.totalorder %s2669_s8, 0 }
  0x99   : > { %2043 = dma.done.wait (%p2686_p1), %s379_s29, 8192  }
  0x9a   : > { %2045 = vsyncadd (%p2686_p1), %s379_s29, 4294959104  ;;  %s2383_s9 = scalar_lea.vmem [#allocation7], %s1245_s22  ;;  %s397_s13 = scalar_lea.sflag [#allocation9], %s2374_s23 }
  0x9b   : > { %s2386_s20 = scalar_lea.vmem [#allocation8], %s1245_s22 }
  0x9c   : > { %2047 = dma.done.wait (%p2686_p1), %s397_s13, 4096  }
  0x9d   : > { %2049 = vsyncadd (%p2686_p1), %s397_s13, 4294963200  ;;  %v2084_v0 = vmov 0.0|0.0   ;;  %vm2085_vm0 = vmmov 0   ;;  %v2086_v1 = vmov 0.0   ;;  %v473_v2 = vld [vmem:[%s2377_s10] sm:$0xff]  ;;  %v474_v3 = vld [vmem:[%s2377_s10 + $0x8] sm:$0xff] }
  0x9e   : > { %1634 = vmatprep.subr.bf16.mxu0 %v2084_v0  ;;  %1456 = vmatprep.mubr.msk.f32.mxu0 %vm2085_vm0, %v2086_v1  ;;  %v475_v4 = vld [vmem:[%s2377_s10 + $0x10] sm:$0xff]  ;;  %v1635_v5 = vpack.c.bf16 %v474_v3, %v473_v2  ;;  %v476_v6 = vld [vmem:[%s2377_s10 + $0x18] sm:$0xff]  ;;  %v477_v8 = vld [vmem:[%s2377_s10 + $0x20] sm:$0xff]  ;;  %s1249_s19 = sshll.u32 %s2068_s27, 1  ;;  %s1248_s21 = sshll.u32 %s2374_s23, 4 }
  0x9f   : > { %1658 = vmatprep.subr.bf16.mxu1 %v2084_v0  ;;  %1491 = vmatprep.mubr.msk.f32.mxu1 %vm2085_vm0, %v2086_v1  ;;  %v1638_v7 = vpack.c.bf16 %v476_v6, %v475_v4  ;;  %v478_v9 = vld [vmem:[%s2377_s10 + $0x28] sm:$0xff]  ;;  %v567_v10 = vld [vmem:[%s2383_s9] sm:$0xff]  ;;  %v569_v12 = vld [vmem:[%s2383_s9 + $0x10] sm:$0xff]  ;;  %p455_p2 = scmp.lt.s32.totalorder %s1249_s19, 3  ;;  %s452_s15 = scalar_lea.vmem [#allocation10], %s1248_s21 }
  0xa0   : > { %1636 = vmatpush3.bf16.msra.mxu0 %v1635_v5  ;;  %v568_v11 = vld [vmem:[%s2383_s9 + $0x8] sm:$0xff]  ;;  %v570_v13 = vld [vmem:[%s2383_s9 + $0x18] sm:$0xff]  ;;  %v1641_v14 = vpack.c.bf16 %v478_v9, %v477_v8  ;;  %v479_v16 = vld [vmem:[%s2377_s10 + $0x30] sm:$0xff]  ;;  %s1059_s11 = sshll.u32 %s452_s15, 4  ;;  %s1321_s18 = sshll.u32 %s2068_s27, 8  ;;  %s2577_s11 = int_to_ptr.vmem [resolvable:$true] %s1059_s11 }
  0xa1   : > { %1637 = vmatprep.subr.bf16.mxu0 %v2084_v0  ;;  %v1659_v15 = vpack.c.bf16 %v568_v11, %v567_v10  ;;  %v480_v17 = vld [vmem:[%s2377_s10 + $0x38] sm:$0xff]  ;;  %v1662_v18 = vpack.c.bf16 %v570_v13, %v569_v12  ;;  %v571_v19 = vld [vmem:[%s2383_s9 + $0x20] sm:$0xff]  ;;  %v572_v20 = vld [vmem:[%s2383_s9 + $0x28] sm:$0xff]  ;;  %s2702_s19 = smov (!%p455_p2, %s1249_s19), 3  ;;  %s1986_s13 = scalar_lea.vmem %s2577_s11, 256 }
  0xa2   : > { %v1644_v21 = vpack.c.bf16 %v480_v17, %v479_v16  ;;  %v481_v22 = vld [vmem:[%s2377_s10 + $0x40] sm:$0xff]  ;;  %v482_v23 = vld [vmem:[%s2377_s10 + $0x48] sm:$0xff]  ;;  %v1665_v24 = vpack.c.bf16 %v572_v20, %v571_v19  ;;  %v573_v25 = vld [vmem:[%s2383_s9 + $0x30] sm:$0xff]  ;;  %s2479_s28 = scalar_lea.vmem %s2633_s2, %s2702_s19  ;;  %s2518_s12 = scalar_lea.vmem %s2635_s4, %s2702_s19 }
  0xa3   : > { %1660 = vmatpush3.bf16.msra.mxu1 %v1659_v15  ;;  %v574_v26 = vld [vmem:[%s2383_s9 + $0x38] sm:$0xff]  ;;  %v1647_v27 = vpack.c.bf16 %v482_v23, %v481_v22  ;;  %v483_v28 = vld [vmem:[%s2377_s10 + $0x50] sm:$0xff]  ;;  %v575_v31 = vld [vmem:[%s2383_s9 + $0x40] sm:$0xff]  ;;  %s469_s14 = scalar_lea.vmem %s2637_s6, %s2702_s19  ;;  %p1987_p13 = scmp.ne.s32.totalorder %s2577_s11, %s1986_s13 }
  0xa4   : > { %1639 = vmatpush3.bf16.msra.mxu0 %v1638_v7  ;;  %1661 = vmatprep.subr.bf16.mxu1 %v2084_v0  ;;  %v484_v29 = vld [vmem:[%s2377_s10 + $0x58] sm:$0xff]  ;;  %v1668_v30 = vpack.c.bf16 %v574_v26, %v573_v25  ;;  %v576_v32 = vld [vmem:[%s2383_s9 + $0x48] sm:$0xff]  ;;  %v485_v34 = vld [vmem:[%s2377_s10 + $0x60] sm:$0xff]  ;;  %p2687_p11 = scmp.ne.s32.totalorder %s2671_s17, 0  ;;  %s2087_s27 = smov [#allocation10]  }
  0xa5   : > { %1640 = vmatprep.subr.bf16.mxu0 %v2084_v0  ;;  %v1650_v33 = vpack.c.bf16 %v484_v29, %v483_v28  ;;  %v486_v35 = vld [vmem:[%s2377_s10 + $0x68] sm:$0xff]  ;;  %v1671_v36 = vpack.c.bf16 %v576_v32, %v575_v31  ;;  %v577_v37 = vld [vmem:[%s2383_s9 + $0x50] sm:$0xff]  ;;  %v578_v38 = vld [vmem:[%s2383_s9 + $0x58] sm:$0xff] }
  0xa6   : > { %v1653_v39 = vpack.c.bf16 %v486_v35, %v485_v34  ;;  %v487_v40 = vld [vmem:[%s2377_s10 + $0x70] sm:$0xff]  ;;  %v488_v41 = vld [vmem:[%s2377_s10 + $0x78] sm:$0xff]  ;;  %v1674_v42 = vpack.c.bf16 %v578_v38, %v577_v37  ;;  %v579_v43 = vld [vmem:[%s2383_s9 + $0x60] sm:$0xff]  ;;  %p1988_p0 = pnand %p1987_p13, %p2687_p11 }
  0xa7   : > { %1663 = vmatpush3.bf16.msra.mxu1 %v1662_v18  ;;  %v580_v44 = vld [vmem:[%s2383_s9 + $0x68] sm:$0xff]  ;;  %v1656_v45 = vpack.c.bf16 %v488_v41, %v487_v40  ;;  %v2441_v47 = vld [vmem:[#allocation2] sm:$0xff]  ;;  %v581_v48 = vld [vmem:[%s2383_s9 + $0x70] sm:$0xff] }
  0xa8   : > { %1642 = vmatpush3.bf16.msra.mxu0 %v1641_v14  ;;  %1664 = vmatprep.subr.bf16.mxu1 %v2084_v0  ;;  %v1677_v46 = vpack.c.bf16 %v580_v44, %v579_v43  ;;  %v582_v49 = vld [vmem:[%s2383_s9 + $0x78] sm:$0xff]  ;;  %v661_v51 = vld [vmem:[%s2386_s20] sm:$0xff]  ;;  %v662_v52 = vld [vmem:[%s2386_s20 + $0x8] sm:$0xff]  ;;  %p1989_p5 = pneg %p1988_p0 }
  0xa9   : > { %1643 = vmatprep.subr.bf16.mxu0 %v2084_v0  ;;  %v1680_v50 = vpack.c.bf16 %v582_v49, %v581_v48  ;;  %v663_v53 = vld [vmem:[%s2386_s20 + $0x10] sm:$0xff]  ;;  %v1683_v54 = vpack.c.bf16 %v662_v52, %v661_v51  ;;  %v664_v55 = vld [vmem:[%s2386_s20 + $0x18] sm:$0xff]  ;;  %v665_v57 = vld [vmem:[%s2386_s20 + $0x20] sm:$0xff] }
  0xaa   : > { %v1686_v56 = vpack.c.bf16 %v664_v55, %v663_v53  ;;  %v666_v58 = vld [vmem:[%s2386_s20 + $0x28] sm:$0xff]  ;;  %v667_v60 = vld [vmem:[%s2386_s20 + $0x30] sm:$0xff]  ;;  %v668_v61 = vld [vmem:[%s2386_s20 + $0x38] sm:$0xff] }
  0xab   : > { %1666 = vmatpush3.bf16.msra.mxu1 %v1665_v24  ;;  %v1689_v59 = vpack.c.bf16 %v666_v58, %v665_v57  ;;  %v1692_v62 = vpack.c.bf16 %v668_v61, %v667_v60  ;;  %v669_v63 = vld [vmem:[%s2386_s20 + $0x40] sm:$0xff]  ;;  %v670_v2 = vld [vmem:[%s2386_s20 + $0x48] sm:$0xff]  ;;  %v671_v4 = vld [vmem:[%s2386_s20 + $0x50] sm:$0xff] }
  0xac   : > { %1645 = vmatpush3.bf16.msra.mxu0 %v1644_v21  ;;  %1667 = vmatprep.subr.bf16.mxu1 %v2084_v0  ;;  %v1695_v3 = vpack.c.bf16 %v670_v2, %v669_v63  ;;  %v672_v5 = vld [vmem:[%s2386_s20 + $0x58] sm:$0xff]  ;;  %v673_v7 = vld [vmem:[%s2386_s20 + $0x60] sm:$0xff]  ;;  %v674_v8 = vld [vmem:[%s2386_s20 + $0x68] sm:$0xff] }
  0xad   : > { %1646 = vmatprep.subr.bf16.mxu0 %v2084_v0  ;;  %v1698_v6 = vpack.c.bf16 %v672_v5, %v671_v4  ;;  %v1701_v9 = vpack.c.bf16 %v674_v8, %v673_v7  ;;  %v1252_v10 = vld [vmem:[%s2479_s28] ss:$0 sm:$0xff]  ;;  %v1255_v11 = vld [vmem:[%s2377_s10 + $0x80] sm:$0xff]  ;;  %v1256_v12 = vld [vmem:[%s2377_s10 + $0x88] sm:$0xff] }
  0xae   : > { %v1707_v16 = vpack.c.bf16 %v1256_v12, %v1255_v11  ;;  %v1257_v18 = vld [vmem:[%s2377_s10 + $0x90] sm:$0xff]  ;;  %v1258_v19 = vld [vmem:[%s2377_s10 + $0x98] sm:$0xff]  ;;  %v1259_v21 = vld [vmem:[%s2377_s10 + $0xa0] sm:$0xff] }
  0xaf   : > { %1669 = vmatpush3.bf16.msra.mxu1 %v1668_v30  ;;  %v1710_v20 = vpack.c.bf16 %v1258_v19, %v1257_v18  ;;  %v1260_v22 = vld [vmem:[%s2377_s10 + $0xa8] sm:$0xff]  ;;  %v1261_v24 = vld [vmem:[%s2377_s10 + $0xb0] sm:$0xff]  ;;  %v1262_v25 = vld [vmem:[%s2377_s10 + $0xb8] sm:$0xff] }
  0xb0   : > { %1648 = vmatpush3.bf16.msra.mxu0 %v1647_v27  ;;  %1670 = vmatprep.subr.bf16.mxu1 %v2084_v0  ;;  %v1713_v23 = vpack.c.bf16 %v1260_v22, %v1259_v21  ;;  %v1716_v26 = vpack.c.bf16 %v1262_v25, %v1261_v24  ;;  %v1263_v27 = vld [vmem:[%s2377_s10 + $0xc0] sm:$0xff]  ;;  %v1264_v28 = vld [vmem:[%s2377_s10 + $0xc8] sm:$0xff]  ;;  %v1265_v30 = vld [vmem:[%s2377_s10 + $0xd0] sm:$0xff] }
  0xb1   : > { %1649 = vmatprep.subr.bf16.mxu0 %v2084_v0  ;;  %v1719_v29 = vpack.c.bf16 %v1264_v28, %v1263_v27  ;;  %v1266_v31 = vld [vmem:[%s2377_s10 + $0xd8] sm:$0xff]  ;;  %v1268_v34 = vld [vmem:[%s2377_s10 + $0xe8] sm:$0xff]  ;;  %v1273_v43 = vld [vmem:[%s2383_s9 + $0x80] sm:$0xff] }
  0xb2   : > { %v1722_v32 = vpack.c.bf16 %v1266_v31, %v1265_v30  ;;  %v1270_v37 = vld [vmem:[%s2377_s10 + $0xf8] sm:$0xff]  ;;  %v1274_v44 = vld [vmem:[%s2383_s9 + $0x88] sm:$0xff]  ;;  %v1277_v53 = vld [vmem:[%s2383_s9 + $0xa0] sm:$0xff] }
  0xb3   : > { %1672 = vmatpush3.bf16.msra.mxu1 %v1671_v36  ;;  %v1269_v36 = vld [vmem:[%s2377_s10 + $0xf0] sm:$0xff]  ;;  %v676_v40 = vld [vmem:[%s2386_s20 + $0x78] sm:$0xff]  ;;  %v1731_v48 = vpack.c.bf16 %v1274_v44, %v1273_v43  ;;  %v1285_v2 = vld [vmem:[%s2383_s9 + $0xe0] sm:$0xff] }
  0xb4   : > { %1651 = vmatpush3.bf16.msra.mxu0 %v1650_v33  ;;  %1673 = vmatprep.subr.bf16.mxu1 %v2084_v0  ;;  %v1267_v33 = vld [vmem:[%s2377_s10 + $0xe0] sm:$0xff]  ;;  %v1728_v38 = vpack.c.bf16 %v1270_v37, %v1269_v36  ;;  %v1276_v51 = vld [vmem:[%s2383_s9 + $0x98] sm:$0xff]  ;;  %v1283_v61 = vld [vmem:[%s2383_s9 + $0xd0] sm:$0xff]  ;;  %s2582_s10 = scalar_lea.hbm %s2638_s7, %s1321_s18 }
  0xb5   : > { %1652 = vmatprep.subr.bf16.mxu0 %v2084_v0  ;;  %v1725_v35 = vpack.c.bf16 %v1268_v34, %v1267_v33  ;;  %v1280_v57 = vld [vmem:[%s2383_s9 + $0xb8] sm:$0xff]  ;;  %v1287_v5 = vld [vmem:[%s2383_s9 + $0xf0] sm:$0xff]  ;;  %v1295_v19 = vld [vmem:[%s2386_s20 + $0xa0] sm:$0xff] }
  0xb6   : > { %v1272_v7 = vld [vmem:[%s2479_s28 + $0x1] ss:$0 sm:$0xff]  ;;  %v1297_v22 = vld [vmem:[%s2386_s20 + $0xb0] sm:$0xff]  ;;  %v1299_v25 = vld [vmem:[%s2386_s20 + $0xc0] sm:$0xff] }
  0xb7   : > { %1675 = vmatpush3.bf16.msra.mxu1 %v1674_v42  ;;  %v1253_v42 = vld [vmem:[%s2518_s12] ss:$0 sm:$0xff]  ;;  %v1301_v28 = vld [vmem:[%s2386_s20 + $0xd0] sm:$0xff]  ;;  %v1303_v31 = vld [vmem:[%s2386_s20 + $0xe0] sm:$0xff] }
  0xb8   : > { %1654 = vmatpush3.bf16.msra.mxu0 %v1653_v39  ;;  %1676 = vmatprep.subr.bf16.mxu1 %v2084_v0  ;;  %v675_v39 = vld [vmem:[%s2386_s20 + $0x70] sm:$0xff]  ;;  %v1254_v37 = vld [vmem:[%s469_s14] ss:$0 sm:$0xff] }
  0xb9   : > { %1655 = vmatprep.subr.bf16.mxu0 %v2084_v0  ;;  %v1704_v41 = vpack.c.bf16 %v676_v40, %v675_v39  ;;  %v1305_v34 = vld [vmem:[%s2386_s20 + $0xf0] sm:$0xff] }
  0xbb   : > { %1678 = vmatpush3.bf16.msra.mxu1 %v1677_v46 }
  0xbc   : > { %1657 = vmatpush3.bf16.msra.mxu0 %v1656_v45  ;;  %1679 = vmatprep.subr.bf16.mxu1 %v2084_v0 }
  0xbd   : > { %1682 = vmatprep.subr.bf16.mxu0 %v2084_v0 }
  0xbf   : > { %1457 = vmatmul.mubr.f32.vlgmr.msra.gmra.mrb[0].mxu0 %v2441_v47  ;;  %1681 = vmatpush3.bf16.msra.mxu1 %v1680_v50  ;;  %v1275_v50 = vld [vmem:[%s2383_s9 + $0x90] sm:$0xff] }
  0xc0   : > { %1526 = vmatprep.mubr.msk.f32.mxu0 %vm2085_vm0, %v2086_v1  ;;  %1706 = vmatprep.subr.bf16.mxu1 %v2084_v0  ;;  %v1734_v52 = vpack.c.bf16 %v1276_v51, %v1275_v50 }
  0xc1   : > { %1684 = vmatpush3.bf16.msra.mxu0 %v1683_v54  ;;  %v1278_v54 = vld [vmem:[%s2383_s9 + $0xa8] sm:$0xff] }
  0xc2   : > { %1685 = vmatprep.subr.bf16.mxu0 %v2084_v0  ;;  %v1737_v55 = vpack.c.bf16 %v1278_v54, %v1277_v53 }
  0xc5   : > { %1687 = vmatpush3.bf16.msra.mxu0 %v1686_v56  ;;  %v1279_v56 = vld [vmem:[%s2383_s9 + $0xb0] sm:$0xff] }
  0xc6   : > { %1688 = vmatprep.subr.bf16.mxu0 %v2084_v0  ;;  %v1740_v58 = vpack.c.bf16 %v1280_v57, %v1279_v56 }
  0xc9   : > { %1690 = vmatpush3.bf16.msra.mxu0 %v1689_v59  ;;  %v1282_v59 = vld [vmem:[%s2383_s9 + $0xc8] sm:$0xff] }
  0xca   : > { %1691 = vmatprep.subr.bf16.mxu0 %v2084_v0 }
  0xcd   : > { %1693 = vmatpush3.bf16.msra.mxu0 %v1692_v62  ;;  %v1284_v62 = vld [vmem:[%s2383_s9 + $0xd8] sm:$0xff] }
  0xce   : > { %1694 = vmatprep.subr.bf16.mxu0 %v2084_v0  ;;  %v1746_v63 = vpack.c.bf16 %v1284_v62, %v1283_v61 }
  0xd1   : > { %1696 = vmatpush3.bf16.msra.mxu0 %v1695_v3  ;;  %v1286_v3 = vld [vmem:[%s2383_s9 + $0xe8] sm:$0xff] }
  0xd2   : > { %1697 = vmatprep.subr.bf16.mxu0 %v2084_v0  ;;  %v1749_v4 = vpack.c.bf16 %v1286_v3, %v1285_v2 }
  0xd5   : > { %1699 = vmatpush3.bf16.msra.mxu0 %v1698_v6  ;;  %v1288_v6 = vld [vmem:[%s2383_s9 + $0xf8] sm:$0xff] }
  0xd6   : > { %1700 = vmatprep.subr.bf16.mxu0 %v2084_v0  ;;  %v1752_v8 = vpack.c.bf16 %v1288_v6, %v1287_v5 }
  0xd9   : > { %1702 = vmatpush3.bf16.msra.mxu0 %v1701_v9 }
  0xda   : > { %1703 = vmatprep.subr.bf16.mxu0 %v2084_v0 }
  0xdd   : > { %1705 = vmatpush3.bf16.msra.mxu0 %v1704_v41  ;;  %v1290_v41 = vld [vmem:[%s2518_s12 + $0x1] ss:$0 sm:$0xff] }
  0xde   : > { %1730 = vmatprep.subr.bf16.mxu0 %v2084_v0 }
 0x192   : > { %v562_v13 = vpop.f32.mrb[0].mxu0 }
 0x193   : > { %v563_v14 = vadd.f32 %v1252_v10, %v562_v13  ;;  %v1458_v15 = vpop.f32.mrb[1].mxu0  ;;  %v1291_v13 = vld [vmem:[%s2386_s20 + $0x80] sm:$0xff] }
 0x194   : > { %v1293_v15 = vld [vmem:[%s2386_s20 + $0x90] sm:$0xff] }
 0x195   : > { %v566_v17 = vmax.f32 %v563_v14, 0.0  ;;  %v1292_v14 = vld [vmem:[%s2386_s20 + $0x88] sm:$0xff] }
 0x197   : > { %1492 = vmatmul.mubr.f32.vlgmr.msra.gmra.mrb[0].mxu1 %v566_v17  ;;  %v1294_v17 = vld [vmem:[%s2386_s20 + $0x98] sm:$0xff] }
 0x198   : > { %1708 = vmatpush3.bf16.msra.mxu1 %v1707_v16  ;;  %1561 = vmatprep.mubr.msk.f32.mxu1 %vm2085_vm0, %v2086_v1  ;;  %v1755_v16 = vpack.c.bf16 %v1292_v14, %v1291_v13  ;;  %v1758_v18 = vpack.c.bf16 %v1294_v17, %v1293_v15 }
 0x199   : > { %1709 = vmatprep.subr.bf16.mxu1 %v2084_v0 }
 0x19c   : > { %1711 = vmatpush3.bf16.msra.mxu1 %v1710_v20  ;;  %v1296_v20 = vld [vmem:[%s2386_s20 + $0xa8] sm:$0xff] }
 0x19d   : > { %1712 = vmatprep.subr.bf16.mxu1 %v2084_v0  ;;  %v1761_v21 = vpack.c.bf16 %v1296_v20, %v1295_v19 }
 0x1a0   : > { %1714 = vmatpush3.bf16.msra.mxu1 %v1713_v23  ;;  %v1298_v23 = vld [vmem:[%s2386_s20 + $0xb8] sm:$0xff] }
 0x1a1   : > { %1715 = vmatprep.subr.bf16.mxu1 %v2084_v0  ;;  %v1764_v24 = vpack.c.bf16 %v1298_v23, %v1297_v22 }
 0x1a4   : > { %1717 = vmatpush3.bf16.msra.mxu1 %v1716_v26  ;;  %v1300_v26 = vld [vmem:[%s2386_s20 + $0xc8] sm:$0xff] }
 0x1a5   : > { %1718 = vmatprep.subr.bf16.mxu1 %v2084_v0  ;;  %v1767_v27 = vpack.c.bf16 %v1300_v26, %v1299_v25 }
 0x1a8   : > { %1720 = vmatpush3.bf16.msra.mxu1 %v1719_v29  ;;  %v1302_v29 = vld [vmem:[%s2386_s20 + $0xd8] sm:$0xff] }
 0x1a9   : > { %1721 = vmatprep.subr.bf16.mxu1 %v2084_v0  ;;  %v1770_v30 = vpack.c.bf16 %v1302_v29, %v1301_v28 }
 0x1ac   : > { %1723 = vmatpush3.bf16.msra.mxu1 %v1722_v32  ;;  %v1304_v32 = vld [vmem:[%s2386_s20 + $0xe8] sm:$0xff] }
 0x1ad   : > { %1724 = vmatprep.subr.bf16.mxu1 %v2084_v0  ;;  %v1773_v33 = vpack.c.bf16 %v1304_v32, %v1303_v31 }
 0x1b0   : > { %1726 = vmatpush3.bf16.msra.mxu1 %v1725_v35  ;;  %v1306_v35 = vld [vmem:[%s2386_s20 + $0xf8] sm:$0xff]  ;;  %s1990_s20 = sshll.u32 %s2087_s27, 4  ;;  %s1991_s20 = int_to_ptr.vmem [resolvable:$false] %s1990_s20 }
 0x1b1   : > { %1727 = vmatprep.subr.bf16.mxu1 %v2084_v0  ;;  %v1776_v36 = vpack.c.bf16 %v1306_v35, %v1305_v34  ;;  %s1992_s19 = scalar_lea.vmem %s1991_s20, 512  ;;  %p1993_p10 = scmp.lt.s32.totalorder %s2577_s11, %s1991_s20 }
 0x1b2   : > { %p1994_p7 = scmp.lt.s32.totalorder %s1992_s19, %s1986_s13 }
 0x1b4   : > { %1729 = vmatpush3.bf16.msra.mxu1 %v1728_v38  ;;  %p1995_p3 = por %p1994_p7, %p1993_p10 }
 0x1b5   : > { %1754 = vmatprep.subr.bf16.mxu1 %v2084_v0 }
 0x1b6   : > { %p1996_p6 = pnand %p1995_p3, %p1989_p5 }
 0x1b7   : > { %1562 = vmatmul.mubr.f32.vlgmr.msra.gmra.mrb[2].mxu1 %v2441_v47 }
 0x1b8   : > { %1631 = vmatprep.mubr.msk.f32.mxu1 %vm2085_vm0, %v2086_v1  ;;  %1756 = vmatpush3.bf16.msra.mxu1 %v1755_v16 }
 0x1b9   : > { %1757 = vmatprep.subr.bf16.mxu1 %v2084_v0 }
 0x1bc   : > { %1759 = vmatpush3.bf16.msra.mxu1 %v1758_v18 }
 0x1bd   : > { %1760 = vmatprep.subr.bf16.mxu1 %v2084_v0 }
 0x1c0   : > { %1762 = vmatpush3.bf16.msra.mxu1 %v1761_v21 }
 0x1c1   : > { %1763 = vmatprep.subr.bf16.mxu1 %v2084_v0 }
 0x1c4   : > { %1765 = vmatpush3.bf16.msra.mxu1 %v1764_v24 }
 0x1c5   : > { %1766 = vmatprep.subr.bf16.mxu1 %v2084_v0 }
 0x1c8   : > { %1768 = vmatpush3.bf16.msra.mxu1 %v1767_v27 }
 0x1c9   : > { %1769 = vmatprep.subr.bf16.mxu1 %v2084_v0 }
 0x1cc   : > { %1771 = vmatpush3.bf16.msra.mxu1 %v1770_v30 }
 0x1cd   : > { %1772 = vmatprep.subr.bf16.mxu1 %v2084_v0 }
 0x1d0   : > { %1774 = vmatpush3.bf16.msra.mxu1 %v1773_v33 }
 0x1d1   : > { %1775 = vmatprep.subr.bf16.mxu1 %v2084_v0 }
 0x1d4   : > { %1777 = vmatpush3.bf16.msra.mxu1 %v1776_v36 }
 0x26a   : > { %v656_v45 = vpop.f32.mrb[0].mxu1 }
 0x26b   : > { %v657_v46 = vadd.f32 %v1253_v42, %v656_v45  ;;  %v1493_v47 = vpop.f32.mrb[1].mxu1  ;;  %v1308_v45 = vld [vmem:[%s469_s14 + $0x1] ss:$0 sm:$0xff] }
 0x26d   : > { %v660_v49 = vmax.f32 %v657_v46, 0.0 }
 0x26f   : > { %1527 = vmatmul.mubr.f32.vlgmr.msra.gmra.mrb[2].mxu0 %v660_v49 }
 0x270   : > { %1732 = vmatpush3.bf16.msra.mxu0 %v1731_v48  ;;  %1596 = vmatprep.mubr.msk.f32.mxu0 %vm2085_vm0, %v2086_v1  ;;  %v1281_v1 = vld [vmem:[%s2383_s9 + $0xc0] sm:$0xff]  ;;  %s1045_s9 = scalar_lea.sflag [#allocation4], %s2374_s23 }
 0x271   : > { %1733 = vmatprep.subr.bf16.mxu0 %v2084_v0  ;;  %v1743_v60 = vpack.c.bf16 %v1282_v59, %v1281_v1 }
 0x274   : > { %1735 = vmatpush3.bf16.msra.mxu0 %v1734_v52 }
 0x275   : > { %1736 = vmatprep.subr.bf16.mxu0 %v2084_v0 }
 0x278   : > { %1738 = vmatpush3.bf16.msra.mxu0 %v1737_v55 }
 0x279   : > { %1739 = vmatprep.subr.bf16.mxu0 %v2084_v0 }
 0x27c   : > { %1741 = vmatpush3.bf16.msra.mxu0 %v1740_v58 }
 0x27d   : > { %1742 = vmatprep.subr.bf16.mxu0 %v2084_v0 }
 0x280   : > { %1744 = vmatpush3.bf16.msra.mxu0 %v1743_v60 }
 0x281   : > { %1745 = vmatprep.subr.bf16.mxu0 %v2084_v0 }
 0x284   : > { %1747 = vmatpush3.bf16.msra.mxu0 %v1746_v63 }
 0x285   : > { %1748 = vmatprep.subr.bf16.mxu0 %v2084_v0 }
 0x288   : > { %1750 = vmatpush3.bf16.msra.mxu0 %v1749_v4 }
 0x289   : > { %1751 = vmatprep.subr.bf16.mxu0 %v2084_v0 }
 0x28a   : > { %v846_v9 = vpop.f32.mrb[2].mxu1 }
 0x28b   : > { %v847_v10 = vadd.f32 %v1272_v7, %v846_v9  ;;  %v1563_v11 = vpop.f32.mrb[3].mxu1 }
 0x28c   : > { %1753 = vmatpush3.bf16.msra.mxu0 %v1752_v8 }
 0x28d   : > { %v850_v12 = vmax.f32 %v847_v10, 0.0 }
 0x28f   : > { %1597 = vmatmul.mubr.f32.vlgmr.msra.gmra.mrb[4].mxu0 %v850_v12 }
 0x342   : > { %v750_v38 = vpop.f32.mrb[2].mxu0 }
 0x343   : > { %v751_v39 = vadd.f32 %v1254_v37, %v750_v38  ;;  %v1528_v40 = vpop.f32.mrb[3].mxu0 }
 0x345   : > { %754 = vst [vmem:[%s452_s15] sm:$0xff] %v751_v39 }
 0x362   : > { %v942_v42 = vpop.f32.mrb[4].mxu0 }
 0x363   : > { %v943_v0 = vadd.f32 %v1290_v41, %v942_v42  ;;  %v1598_v43 = vpop.f32.mrb[5].mxu0 }
 0x365   : > { %v946_v44 = vmax.f32 %v943_v0, 0.0 }
 0x367   : > { %1632 = vmatmul.mubr.f32.vlgmr.msra.gmra.mrb[4].mxu1 %v946_v44 }
 0x43a   : > { %v1038_v46 = vpop.f32.mrb[4].mxu1 }
 0x43b   : > { %v1039_v47 = vadd.f32 %v1308_v45, %v1038_v46  ;;  %v1633_v48 = vpop.f32.mrb[5].mxu1 }
 0x43d   : > { %1309 = vst [vmem:[%s452_s15 + $0x8] sm:$0xff] %v1039_v47 }
 0x43e   : > { %1999 = shalt.err (!%p1996_p6)
}
 0x43f   : > { %s2000_s8 = scalar_lea.hbm %s2582_s10, 256  ;;  %s2004_s1 = scalar_lea.hbm %s2638_s7, 512 }
 0x440   : > { %p2001_p4 = scmp.ne.s32.totalorder %s2582_s10, %s2000_s8  ;;  %p2005_p12 = scmp.lt.u32.totalorder %s2582_s10, %s2638_s7 }
 0x441   : > { %p2006_p1 = scmp.lt.u32.totalorder %s2004_s1, %s2000_s8  ;;  %p2008_p13 = scmp.lt.u32.totalorder %s2000_s8, %s2582_s10 }
 0x442   : > { %p2002_p9 = pnand %p2001_p4, %p2687_p11 }
 0x443   : > { %p2007_p2 = por %p2006_p1, %p2005_p12 }
 0x444   : > { %p2003_p8 = pneg %p2002_p9 }
 0x445   : > { %p2009_p0 = por %p2008_p13, %p2007_p2 }
 0x447   : > { %p2010_p5 = pnand %p2009_p0, %p2003_p8 }
 0x449   : > { %2013 = shalt.err (!%p2010_p5)
}
 0x44a   : > { %s2088_s3 = smov 128   ;;  %s2089_s24 = smov 8  }
 0x44b   : > { %1788 = dma.vmem_to_hbm [thread:$0]  (%p2687_p11), %s2577_s11, 256, %s2582_s10, %s1045_s9, %s2088_s3, %s2088_s3, %s2089_s24  }
 0x44c PF: > { %s2688_s14 = sld [smem:[#allocation15_spill]]  ;;  %s2689_s21 = sld [smem:[#allocation20_spill]] }
 0x44d   : > { %s2690_s15 = sld [smem:[#allocation17_spill]] }
 0x452   : > { %s1074_s18 = sand.u32 1, %s2688_s14   ;;  %p2691_p10 = scmp.ne.s32.totalorder %s2689_s21, 0 }
 0x453   : > { %p2692_p7 = scmp.ge.s32.totalorder %s2690_s15, 2  ;;  %s1075_s22 = scalar_lea.sflag [#allocation4], %s1074_s18 }
 0x455   : > { %p1805_p3 = pnand %p2692_p7, %p2691_p10 }
 0x457   : > { %2051 = dma.done.wait (!%p1805_p3), %s1075_s22, 256  }
 0x458   : > { %2053 = vsyncadd (!%p1805_p3), %s1075_s22, 4294967040  ;;  %s27_s29 = sadd.s32 1, %s2690_s15   ;;  %s2693_s13 = sld [smem:[#allocation19_spill]] }
 0x459   : > { %p24_p6 = scmp.ge.s32.totalorder %s27_s29, 4   ;;  %s2694_s27 = sld [smem:[#allocation16_spill]] }
 0x45a   : > { %s2695_s28 = sld [smem:[#allocation18_spill]]  ;;  %s2696_s24 = smov %s2060_s25 }
 0x45b   : > { %s2697_s25 = smov %s2064_s26  ;;  %26 = sbr.rel (!%p24_p6) target bundleno = 12 (0xc), region = 139 }
 0x45e   : > { %s2698_s26 = smov %s2693_s13 }
 0x462   :  { %1080 = vsyncpa [#allocation3], 1 }
 0x463   :  { %1082 = vsyncpa [#allocation3 + $0x1], 1 }
 0x464   :  { %1083 = vsyncpa [#allocation6], 1 }
 0x465   :  { %1085 = vsyncpa [#allocation6 + $0x1], 1 }
 0x466   :  { %1086 = vsyncpa [#allocation9], 1 }
 0x467   :  { %1088 = vsyncpa [#allocation9 + $0x1], 1 }
 0x468   :  { %1089 = vsyncpa [#allocation4], 1 }
 0x469   :  { %1091 = vsyncpa [#allocation4 + $0x1], 1 }

</bundles_post_ra>
